<compile_context>
chip_gen: v7x
topology: tpu7x:2x2x1
jax: 0.10.0
libtpu: 0.0.40
codegen_flags: <defaults>
</compile_context>

<pallas_src>
import functools

import jax
import jax.numpy as jnp
from jax.experimental import pallas as pl
from jax.experimental.pallas import tpu as pltpu

_LANES = 128   # padded feature width for all hidden activations / weight out-dims
_SUBS = 16     # sublane alignment of weight-slab row blocks (bf16 packs 16 rows/vreg)


def _round_up(x, m):
    return (x + m - 1) // m * m


# --------------------------------------------------------------------------- kernel
def _shared_enc_avn_kernel(obs_ref, act_ref, w_ref, b_ref, out_ref, *, obs_p, act_p):
    # weight-slab row offsets (static python ints, all multiples of 16 -> aligned slices)
    r1 = obs_p                 # start of W1 (encoder-output half)
    r2 = r1 + _LANES           # start of W1 (action half)
    r3 = r2 + act_p            # start of W2
    r4 = r3 + _LANES           # start of final-layer row block

    f32 = jnp.float32
    bf16 = jnp.bfloat16

    obs = obs_ref[...]                                   # (TILE_B, obs_p)  bf16
    act = act_ref[...]                                   # (TILE_B, act_p)  bf16

    w_enc = w_ref[0:r1, :]                               # (obs_p, 128)     bf16
    w1h = w_ref[r1:r2, :]                                # (128, 128)
    w1a = w_ref[r2:r3, :]                                # (act_p, 128)
    w2 = w_ref[r3:r4, :]                                 # (128, 128)
    wf_blk = w_ref[r4:r4 + _SUBS, :]                     # (16, 128), row 0 = wf^T

    b_enc = b_ref[0:1, :]                                # (1, 128) f32
    b1 = b_ref[1:2, :]
    b2 = b_ref[2:3, :]
    bf = b_ref[3:4, 0:1]                                 # (1, 1) f32 scalar bias

    # shared encoder: Linear + ReLU (padded lanes stay exactly 0)
    h = jnp.maximum(jnp.dot(obs, w_enc, preferred_element_type=f32) + b_enc, 0.0)

    # MLP layer 1: Linear(concat([h, action])) + ReLU  == split matmuls (exact)
    z1 = (jnp.dot(h.astype(bf16), w1h, preferred_element_type=f32)
          + jnp.dot(act, w1a, preferred_element_type=f32)
          + b1)
    x1 = jnp.maximum(z1, 0.0)

    # MLP layer 2: Linear + ReLU
    x2 = jnp.maximum(
        jnp.dot(x1.astype(bf16), w2, preferred_element_type=f32) + b2, 0.0)

    # final layer, transposed form: (16,128) x (TILE_B,128)^T -> (16, TILE_B);
    # row 0 is the real result -> lane-dense (1, TILE_B) output row.
    q16 = jax.lax.dot_general(
        wf_blk, x2.astype(bf16),
        dimension_numbers=(((1,), (1,)), ((), ())),
        preferred_element_type=f32)
    q = q16[0:1, :] + bf                                  # (1, TILE_B) f32
    out_ref[...] = jnp.reshape(q, out_ref.shape)


# -------------------------------------------------------------------- host packing
def init_params(key, obs_dim, enc_out_dim, action_dim, hidden_dims):
    """Deterministic synthetic parameter init.

    Weights are stored as (in, out) = W.T relative to torch.nn.Linear."""
    # TODO(synk): ortho_init_ (orthogonal init) is replaced by a scaled normal init;
    # it only changes parameter values, not the forward-pass computation.
    assert len(hidden_dims) == 2
    h1, h2 = hidden_dims
    ks = jax.random.split(key, 4)

    def lin(k, n_in, n_out):
        scale = 1.0 / jnp.sqrt(jnp.float32(n_in))
        w = jax.random.normal(k, (n_in, n_out), jnp.float32) * scale
        b = jnp.zeros((1, n_out), jnp.float32)
        return w, b

    w_enc, b_enc = lin(ks[0], obs_dim, enc_out_dim)                 # shared encoder
    w1, b1 = lin(ks[1], enc_out_dim + action_dim, h1)               # MLP layer 1
    w2, b2 = lin(ks[2], h1, h2)                                     # MLP layer 2
    wf, bf = lin(ks[3], h2, 1)                                      # final layer
    return (w_enc, b_enc, w1, b1, w2, b2, wf, bf)


def pack_params(params, obs_dim, enc_out_dim, action_dim, hidden_dims):
    """Pack all layers into one bf16 weight slab + one f32 bias slab (done once)."""
    h1, h2 = hidden_dims
    w_enc, b_enc, w1, b1, w2, b2, wf, bf = params
    obs_p = _round_up(obs_dim, _SUBS)
    act_p = _round_up(action_dim, _SUBS)
    r1 = obs_p
    r2 = r1 + _LANES
    r3 = r2 + act_p
    r4 = r3 + _LANES
    rows = r4 + _SUBS

    w_slab = jnp.zeros((rows, _LANES), jnp.float32)
    w_slab = w_slab.at[:obs_dim, :enc_out_dim].set(w_enc)
    w_slab = w_slab.at[r1:r1 + enc_out_dim, :h1].set(w1[:enc_out_dim])
    w_slab = w_slab.at[r2:r2 + action_dim, :h1].set(w1[enc_out_dim:])
    w_slab = w_slab.at[r3:r3 + h1, :h2].set(w2)
    w_slab = w_slab.at[r4, :h2].set(wf[:, 0])
    w_slab = w_slab.astype(jnp.bfloat16)

    b_slab = jnp.zeros((8, _LANES), jnp.float32)
    b_slab = b_slab.at[0, :enc_out_dim].set(b_enc[0])
    b_slab = b_slab.at[1, :h1].set(b1[0])
    b_slab = b_slab.at[2, :h2].set(b2[0])
    b_slab = b_slab.at[3, 0].set(bf[0, 0])
    return w_slab, b_slab


# ------------------------------------------------------------------------- wrapper
def _pad_cast_bf16(x, rows, cols):
    r, c = x.shape
    x = x.astype(jnp.bfloat16)
    if (r, c) != (rows, cols):
        x = jnp.pad(x, ((0, rows - r), (0, cols - c)))
    return x


def shared_encoder_action_value_net(action, obs, packed, *, tile_b=None):
    w_slab, b_slab = packed
    batch, obs_dim = obs.shape
    _, act_dim = action.shape
    obs_p = _round_up(obs_dim, _SUBS)
    act_p = _round_up(act_dim, _SUBS)

    if tile_b is None:
        # single full-batch tile when it fits comfortably; 1024-row tiles otherwise
        tile_b = 1024 if batch > 1024 else _round_up(batch, 8)
    batch_pad = _round_up(batch, tile_b)
    grid_n = batch_pad // tile_b
    if grid_n > 1:
        # lane-dense output row per tile requires a 128-multiple tile width
        assert tile_b % _LANES == 0, tile_b

    # pad + cast the streamed activations (bf16 halves HBM bytes for the batch stream)
    obs_in = _pad_cast_bf16(obs, batch_pad, obs_p)
    act_in = _pad_cast_bf16(action, batch_pad, act_p)

    kernel = functools.partial(_shared_enc_avn_kernel, obs_p=obs_p, act_p=act_p)

    flops = 2 * batch_pad * (obs_p * _LANES + _LANES * _LANES
                             + act_p * _LANES + _LANES * _LANES + _LANES)
    bytes_accessed = ((obs_in.size + act_in.size + w_slab.size) * 2
                      + b_slab.size * 4 + batch_pad * 4)

    out = pl.pallas_call(
        kernel,
        out_shape=jax.ShapeDtypeStruct((grid_n, 1, tile_b), jnp.float32),
        grid=(grid_n,),
        in_specs=[
            # batch-streamed tiles advance with the grid step
            pl.BlockSpec((tile_b, obs_p), lambda i: (i, 0)),
            pl.BlockSpec((tile_b, act_p), lambda i: (i, 0)),
            # weights/biases: constant index_map -> fetched once, resident in VMEM
            pl.BlockSpec(w_slab.shape, lambda i: (0, 0)),
            pl.BlockSpec(b_slab.shape, lambda i: (0, 0)),
        ],
        # lane-dense (1, TILE_B) output row per tile (avoids masked (TILE_B,1) stores)
        out_specs=pl.BlockSpec((1, 1, tile_b), lambda i: (i, 0, 0)),
        compiler_params=pltpu.CompilerParams(
            dimension_semantics=("parallel",)),
        cost_estimate=pl.CostEstimate(
            flops=flops, transcendentals=0, bytes_accessed=bytes_accessed),
    )(obs_in, act_in, w_slab, b_slab)

    return out.reshape(batch_pad, 1)[:batch]


# ----------------------------------------------------------------------- reference
def reference_forward(action, obs, params):
    """Pure-JAX reference mirroring the kernel's bf16 MXU inputs / f32 accumulation."""
    w_enc, b_enc, w1, b1, w2, b2, wf, bf = params

    def bdot(a, w):
        return jnp.dot(a.astype(jnp.bfloat16), w.astype(jnp.bfloat16),
                       preferred_element_type=jnp.float32)

    h = jnp.maximum(bdot(obs, w_enc) + b_enc, 0.0)
    x = jnp.concatenate([h, action], axis=1)
    x = jnp.maximum(bdot(x, w1) + b1, 0.0)
    x = jnp.maximum(bdot(x, w2) + b2, 0.0)
    return bdot(x, wf) + bf


if __name__ == "__main__":
    batch = 2
    obs_dim = 16        # raw observation dim fed to the shared encoder
    enc_out_dim = 32    # encoder_out_dim
    action_dim = 4
    hidden_dims = [32, 32]

    key = jax.random.PRNGKey(0)
    k_obs, k_act, k_par, k_obs2, k_act2 = jax.random.split(key, 5)
    obs = jax.random.normal(k_obs, (batch, obs_dim), jnp.float32)
    action = jax.random.normal(k_act, (batch, action_dim), jnp.float32)

    params = init_params(k_par, obs_dim, enc_out_dim, action_dim, hidden_dims)
    packed = pack_params(params, obs_dim, enc_out_dim, action_dim, hidden_dims)

    # primary (small-batch, single-tile) check
    out = shared_encoder_action_value_net(action, obs, packed)
    out = jax.block_until_ready(out)
    ref = reference_forward(action, obs, params)
    assert out.shape == (batch, 1), out.shape
    assert jnp.allclose(out, ref, atol=1e-2, rtol=1e-2), (out, ref)

    # multi-tile path (grid_n > 1 with batch padding) check
    batch2 = 300
    obs2 = jax.random.normal(k_obs2, (batch2, obs_dim), jnp.float32)
    act2 = jax.random.normal(k_act2, (batch2, action_dim), jnp.float32)
    out2 = jax.block_until_ready(
        shared_encoder_action_value_net(act2, obs2, packed, tile_b=128))
    ref2 = reference_forward(act2, obs2, params)
    assert out2.shape == (batch2, 1), out2.shape
    assert jnp.allclose(out2, ref2, atol=1e-2, rtol=1e-2)

    print("KERNEL_OK")
</pallas_src>

<mosaic_0001>
module attributes {stable_mosaic.version = 11 : i64} {
  func.func @_shared_enc_avn_kernel(%arg0: i32, %arg1: memref<8x16xbf16, #tpu.memory_space<vmem>>, %arg2: memref<8x16xbf16, #tpu.memory_space<vmem>>, %arg3: memref<304x128xbf16, #tpu.memory_space<vmem>>, %arg4: memref<8x128xf32, #tpu.memory_space<vmem>>, %arg5: memref<1x1x8xf32, #tpu.memory_space<vmem>>) attributes {dimension_semantics = [#tpu.dimension_semantics<parallel>], iteration_bounds = array<i64: 1>, scalar_prefetch = 0 : i64, scratch_operands = 0 : i64, tpu.core_type = #tpu.core_type<tc>, window_params = [{transform_indices = @transform_0, window_bounds = array<i64: 8, 16>}, {transform_indices = @transform_1, window_bounds = array<i64: 8, 16>}, {pipeline_mode = #tpu.pipeline_mode<synchronous>, transform_indices = @transform_2, window_bounds = array<i64: 304, 128>}, {pipeline_mode = #tpu.pipeline_mode<synchronous>, transform_indices = @transform_3, window_bounds = array<i64: 8, 128>}, {transform_indices = @transform_4, window_bounds = array<i64: 1, 1, 8>}]} {
    %c0 = arith.constant 0 : index
    %c0_0 = arith.constant 0 : index
    %0 = vector.load %arg1[%c0, %c0_0] : memref<8x16xbf16, #tpu.memory_space<vmem>>, vector<8x16xbf16>
    %c0_1 = arith.constant 0 : index
    %c0_2 = arith.constant 0 : index
    %1 = vector.load %arg2[%c0_1, %c0_2] : memref<8x16xbf16, #tpu.memory_space<vmem>>, vector<8x16xbf16>
    %c0_3 = arith.constant 0 : index
    %c0_4 = arith.constant 0 : index
    %2 = vector.load %arg3[%c0_3, %c0_4] : memref<304x128xbf16, #tpu.memory_space<vmem>>, vector<16x128xbf16>
    %c16 = arith.constant 16 : index
    %c0_5 = arith.constant 0 : index
    %3 = vector.load %arg3[%c16, %c0_5] : memref<304x128xbf16, #tpu.memory_space<vmem>>, vector<128x128xbf16>
    %c144 = arith.constant 144 : index
    %c0_6 = arith.constant 0 : index
    %4 = vector.load %arg3[%c144, %c0_6] : memref<304x128xbf16, #tpu.memory_space<vmem>>, vector<16x128xbf16>
    %c160 = arith.constant 160 : index
    %c0_7 = arith.constant 0 : index
    %5 = vector.load %arg3[%c160, %c0_7] : memref<304x128xbf16, #tpu.memory_space<vmem>>, vector<128x128xbf16>
    %c288 = arith.constant 288 : index
    %c0_8 = arith.constant 0 : index
    %6 = vector.load %arg3[%c288, %c0_8] : memref<304x128xbf16, #tpu.memory_space<vmem>>, vector<16x128xbf16>
    %c0_9 = arith.constant 0 : index
    %c0_10 = arith.constant 0 : index
    %7 = vector.load %arg4[%c0_9, %c0_10] : memref<8x128xf32, #tpu.memory_space<vmem>>, vector<1x128xf32>
    %c1 = arith.constant 1 : index
    %c0_11 = arith.constant 0 : index
    %8 = vector.load %arg4[%c1, %c0_11] : memref<8x128xf32, #tpu.memory_space<vmem>>, vector<1x128xf32>
    %c2 = arith.constant 2 : index
    %c0_12 = arith.constant 0 : index
    %9 = vector.load %arg4[%c2, %c0_12] : memref<8x128xf32, #tpu.memory_space<vmem>>, vector<1x128xf32>
    %c3 = arith.constant 3 : index
    %c0_13 = arith.constant 0 : index
    %10 = vector.load %arg4[%c3, %c0_13] : memref<8x128xf32, #tpu.memory_space<vmem>>, vector<1x1xf32>
    %cst = arith.constant dense<0.000000e+00> : vector<8x128xf32>
    %11 = tpu.matmul %0, %2, %cst {dimension_numbers = #tpu.dot_dimension_numbers<[1], [0], [0], [1], [0, 0, 1, 1], [], []>} : vector<8x16xbf16>, vector<16x128xbf16>, vector<8x128xf32> -> vector<8x128xf32>
    %12 = vector.broadcast %7 : vector<1x128xf32> to vector<8x128xf32>
    %13 = arith.addf %11, %12 : vector<8x128xf32>
    %cst_14 = arith.constant 0.000000e+00 : f32
    %14 = vector.broadcast %cst_14 : f32 to vector<8x128xf32>
    %15 = arith.maximumf %13, %14 : vector<8x128xf32>
    %16 = arith.truncf %15 : vector<8x128xf32> to vector<8x128xbf16>
    %cst_15 = arith.constant dense<0.000000e+00> : vector<8x128xf32>
    %17 = tpu.matmul %16, %3, %cst_15 {dimension_numbers = #tpu.dot_dimension_numbers<[1], [0], [0], [1], [0, 0, 1, 1], [], []>} : vector<8x128xbf16>, vector<128x128xbf16>, vector<8x128xf32> -> vector<8x128xf32>
    %cst_16 = arith.constant dense<0.000000e+00> : vector<8x128xf32>
    %18 = tpu.matmul %1, %4, %cst_16 {dimension_numbers = #tpu.dot_dimension_numbers<[1], [0], [0], [1], [0, 0, 1, 1], [], []>} : vector<8x16xbf16>, vector<16x128xbf16>, vector<8x128xf32> -> vector<8x128xf32>
    %19 = arith.addf %17, %18 : vector<8x128xf32>
    %20 = vector.broadcast %8 : vector<1x128xf32> to vector<8x128xf32>
    %21 = arith.addf %19, %20 : vector<8x128xf32>
    %cst_17 = arith.constant 0.000000e+00 : f32
    %22 = vector.broadcast %cst_17 : f32 to vector<8x128xf32>
    %23 = arith.maximumf %21, %22 : vector<8x128xf32>
    %24 = arith.truncf %23 : vector<8x128xf32> to vector<8x128xbf16>
    %cst_18 = arith.constant dense<0.000000e+00> : vector<8x128xf32>
    %25 = tpu.matmul %24, %5, %cst_18 {dimension_numbers = #tpu.dot_dimension_numbers<[1], [0], [0], [1], [0, 0, 1, 1], [], []>} : vector<8x128xbf16>, vector<128x128xbf16>, vector<8x128xf32> -> vector<8x128xf32>
    %26 = vector.broadcast %9 : vector<1x128xf32> to vector<8x128xf32>
    %27 = arith.addf %25, %26 : vector<8x128xf32>
    %cst_19 = arith.constant 0.000000e+00 : f32
    %28 = vector.broadcast %cst_19 : f32 to vector<8x128xf32>
    %29 = arith.maximumf %27, %28 : vector<8x128xf32>
    %30 = arith.truncf %29 : vector<8x128xf32> to vector<8x128xbf16>
    %cst_20 = arith.constant dense<0.000000e+00> : vector<16x8xf32>
    %31 = tpu.matmul %6, %30, %cst_20 {dimension_numbers = #tpu.dot_dimension_numbers<[1], [1], [0], [0], [0, 0, 1, 0], [], []>} : vector<16x128xbf16>, vector<8x128xbf16>, vector<16x8xf32> -> vector<16x8xf32>
    %32 = vector.extract_strided_slice %31 {offsets = [0, 0], sizes = [1, 8], strides = [1, 1]} : vector<16x8xf32> to vector<1x8xf32>
    %33 = vector.broadcast %10 : vector<1x1xf32> to vector<1x8xf32>
    %34 = arith.addf %32, %33 : vector<1x8xf32>
    %35 = vector.shape_cast %34 : vector<1x8xf32> to vector<1x1x8xf32>
    %c0_21 = arith.constant 0 : index
    %c0_22 = arith.constant 0 : index
    %c0_23 = arith.constant 0 : index
    %36 = vector.load %arg5[%c0_21, %c0_22, %c0_23] : memref<1x1x8xf32, #tpu.memory_space<vmem>>, vector<1x1x8xf32>
    tpu.vector_store %arg5[%c0_21, %c0_22, %c0_23], %35 {strides = array<i32>} : memref<1x1x8xf32, #tpu.memory_space<vmem>>, vector<1x1x8xf32>,
    return
  }
  func.func @transform_0(%arg0: i32) -> (i32, i32) {
    %c0_i32 = arith.constant 0 : i32
    %c0_i32_0 = arith.constant 0 : i32
    return %arg0, %c0_i32 : i32, i32
  }
  func.func @transform_1(%arg0: i32) -> (i32, i32) {
    %c0_i32 = arith.constant 0 : i32
    %c0_i32_0 = arith.constant 0 : i32
    return %arg0, %c0_i32 : i32, i32
  }
  func.func @transform_2(%arg0: i32) -> (i32, i32) {
    %c0_i32 = arith.constant 0 : i32
    %c0_i32_0 = arith.constant 0 : i32
    %c0_i32_1 = arith.constant 0 : i32
    return %c0_i32, %c0_i32_0 : i32, i32
  }
  func.func @transform_3(%arg0: i32) -> (i32, i32) {
    %c0_i32 = arith.constant 0 : i32
    %c0_i32_0 = arith.constant 0 : i32
    %c0_i32_1 = arith.constant 0 : i32
    return %c0_i32, %c0_i32_0 : i32, i32
  }
  func.func @transform_4(%arg0: i32) -> (i32, i32, i32) {
    %c0_i32 = arith.constant 0 : i32
    %c0_i32_0 = arith.constant 0 : i32
    %c0_i32_1 = arith.constant 0 : i32
    return %arg0, %c0_i32, %c0_i32_0 : i32, i32, i32
  }
}

</mosaic_0001>

<bundles_post_ra>
// kernel: tpu_custom_call.1
= control target key start
LH: loop header
LB: loop body
LE: loop exit
PB: predicated region body
PF: predicated region fallthrough
CT: control target
= control target key end

     0   :  { %9 = vsyncpa [#allocation3], 0  ;;  %s818_s0 = inlined_call_operand.hbm [shape: bf16[8,16], index: 0, kind: input, shape index: {}]   ;;  %s819_s1 = inlined_call_operand.hbm [shape: bf16[8,16], index: 1, kind: input, shape index: {}]   ;;  %s820_s2 = inlined_call_operand.hbm [shape: bf16[304,128], index: 2, kind: input, shape index: {}]   ;;  %s821_s3 = inlined_call_operand.vmem [shape: f32[8,128], index: 3, kind: input, shape index: {}]   ;;  %s822_s4 = inlined_call_operand.hbm [shape: f32[1,1,8], index: 4, kind: output, shape index: {}]  }
   0x1   :  { %10 = vsyncpa [#allocation6], 0 }
   0x2   :  { %11 = vsyncpa [#allocation4], 0  ;;  %s693_s15 = smov [#allocation5]   ;;  %s694_s17 = smov [#allocation2]  }
   0x3   :  { %s28_s16 = sshll.u32 %s693_s15, 4  ;;  %s18_s18 = sshll.u32 %s694_s17, 4  ;;  %s29_s16 = int_to_ptr.vmem [resolvable:$true] %s28_s16  ;;  %s19_s18 = int_to_ptr.vmem [resolvable:$true] %s18_s18 }
   0x4   :  { %s599_s21 = scalar_lea.hbm %s819_s1, 64 }
   0x5   :  { %p600_p0 = scmp.ne.s32.totalorder %s819_s1, %s599_s21  ;;  %p603_p1 = scmp.lt.u32.totalorder %s599_s21, %s819_s1 }
   0x7   :  { %p605_p2 = pnand %p603_p1, %p600_p0 }
   0x9   :  { %608 = shalt.err (!%p605_p2)
}
   0xa   :  { %s609_s26 = scalar_lea.vmem %s29_s16, 64  ;;  %p614_p4 = scmp.lt.s32.totalorder %s29_s16, %s29_s16 }
   0xb   :  { %p610_p3 = scmp.ne.s32.totalorder %s29_s16, %s609_s26  ;;  %p615_p5 = scmp.lt.s32.totalorder %s609_s26, %s609_s26 }
   0xd   :  { %p616_p6 = por %p615_p5, %p614_p4 }
   0xf   :  { %p617_p7 = pnand %p616_p6, %p610_p3 }
  0x11   :  { %620 = shalt.err (!%p617_p7)
}
  0x12   :  { %31 = dma.hbm_to_vmem [thread:$0]  %s819_s1, 64, %s29_s16, [#allocation6]  }
  0x13   :  { %s621_s5 = scalar_lea.hbm %s818_s0, 64 }
  0x14   :  { %p622_p8 = scmp.ne.s32.totalorder %s818_s0, %s621_s5  ;;  %p625_p9 = scmp.lt.u32.totalorder %s621_s5, %s818_s0 }
  0x16   :  { %p627_p10 = pnand %p625_p9, %p622_p8 }
  0x18   :  { %630 = shalt.err (!%p627_p10)
}
  0x19   :  { %s631_s10 = scalar_lea.vmem %s19_s18, 64  ;;  %p636_p12 = scmp.lt.s32.totalorder %s19_s18, %s19_s18 }
  0x1a   :  { %p632_p11 = scmp.ne.s32.totalorder %s19_s18, %s631_s10  ;;  %p637_p13 = scmp.lt.s32.totalorder %s631_s10, %s631_s10 }
  0x1c   :  { %p638_p0 = por %p637_p13, %p636_p12 }
  0x1e   :  { %p639_p1 = pnand %p638_p0, %p632_p11 }
  0x20   :  { %642 = shalt.err (!%p639_p1)
}
  0x21   :  { %21 = dma.hbm_to_vmem [thread:$0]  %s818_s0, 64, %s19_s18, [#allocation3]  }
  0x22   :  { %s695_s12 = smov [#allocation7]   ;;  %s643_s16 = scalar_lea.hbm %s820_s2, 2432 }
  0x23   :  { %s37_s13 = sshll.u32 %s695_s12, 4  ;;  %p644_p2 = scmp.ne.s32.totalorder %s820_s2, %s643_s16  ;;  %s38_s13 = int_to_ptr.vmem [resolvable:$true] %s37_s13 }
  0x24   :  { %p647_p3 = scmp.lt.u32.totalorder %s643_s16, %s820_s2 }
  0x26   :  { %p649_p4 = pnand %p647_p3, %p644_p2 }
  0x28   :  { %652 = shalt.err (!%p649_p4)
}
  0x29   :  { %s653_s22 = scalar_lea.vmem %s38_s13, 2432  ;;  %p658_p6 = scmp.lt.s32.totalorder %s38_s13, %s38_s13 }
  0x2a   :  { %p654_p5 = scmp.ne.s32.totalorder %s38_s13, %s653_s22  ;;  %p659_p7 = scmp.lt.s32.totalorder %s653_s22, %s653_s22 }
  0x2c   :  { %p660_p8 = por %p659_p7, %p658_p6 }
  0x2e   :  { %p661_p9 = pnand %p660_p8, %p654_p5 }
  0x30   :  { %664 = shalt.err (!%p661_p9)
}
  0x31   :  { %s696_s0 = smov 64   ;;  %s697_s18 = smov 4  }
  0x32   :  { %43 = dma.hbm_to_vmem [thread:$0]  %s820_s2, 2432, %s38_s13, [#allocation6], %s696_s0, %s696_s0, %s697_s18  }
  0x33   :  { %687 = dma.done.wait [#allocation3], 64  }
  0x34   :  { %688 = vsyncadd [#allocation3], 4294967232 }
  0x35   :  { %689 = dma.done.wait [#allocation6], 2496  }
  0x36   :  { %690 = vsyncadd [#allocation6], 4294964800  ;;  %v698_v0 = vmov 0.0   ;;  %vm699_vm0 = vmmov 0   ;;  %v580_v1 = vld [vmem:[#allocation7] sm:$0xff]   ;;  %vm110_vm1 = vcmask 130048  }
  0x37   :  { %512 = vmatprep.subr.bf16.mxu0 %v698_v0  ;;  %514 = vmatprep.mubr.msk.bf16.mxu0 %vm699_vm0, %v698_v0  ;;  %v56_v2 = vld [vmem:[#allocation2] sm:$0xf]  ;;  %v581_v3 = vld [vmem:[#allocation7 + $0x8] sm:$0xff]   ;;  %v582_v4 = vld [vmem:[#allocation7 + $0x10] sm:$0xff]   ;;  %v700_v43 = vmov 0   ;;  %s701_s6 = smov [#allocation8]  }
  0x38   :  { %518 = vmatprep.subr.bf16.mxu1 %v698_v0  ;;  %520 = vmatprep.mubr.msk.bf16.mxu1 %vm699_vm0, %v698_v0  ;;  %v583_v5 = vld [vmem:[#allocation7 + $0x18] sm:$0xff]   ;;  %v584_v6 = vld [vmem:[#allocation7 + $0x20] sm:$0xff]   ;;  %v585_v7 = vld [vmem:[#allocation7 + $0x28] sm:$0xff]   ;;  %s454_s7 = sshll.u32 %s701_s6, 4  ;;  %vm446_vm2 = vcmask 57344   ;;  %s455_s7 = int_to_ptr.vmem [resolvable:$true] %s454_s7 }
  0x39   :  { %513 = vmatpush3.bf16.msra.mxu0 %v580_v1  ;;  %v586_v8 = vld [vmem:[#allocation7 + $0x30] sm:$0xff]   ;;  %v587_v9 = vld [vmem:[#allocation7 + $0x38] sm:$0xff]   ;;  %v588_v10 = vld [vmem:[#allocation7 + $0x48] sm:$0xff]   ;;  %579 = vset.pattern.permute.xlu0 %v700_v43  ;;  %s669_s8 = scalar_lea.vmem %s455_s7, 32  ;;  %p670_p11 = scmp.lt.s32.totalorder %s455_s7, %s455_s7 }
  0x3a   :  { %524 = vmatprep.subr.bf16.mxu0 %v698_v0  ;;  %519 = vmatpush3.bf16.msra.mxu1 %v588_v10  ;;  %v589_v11 = vld [vmem:[#allocation7 + $0x40] sm:$0xff]   ;;  %v57_v12 = vld [vmem:[#allocation5] sm:$0xf]  ;;  %v590_v13 = vld [vmem:[#allocation7 + $0x50] sm:$0xff]  }
  0x3b   :  { %544 = vmatprep.subr.bf16.mxu1 %v698_v0  ;;  %v591_v14 = vld [vmem:[#allocation7 + $0x58] sm:$0xff]   ;;  %v592_v15 = vld [vmem:[#allocation7 + $0x60] sm:$0xff]   ;;  %v593_v16 = vld [vmem:[#allocation7 + $0x68] sm:$0xff]  }
  0x3c   :  { %515 = vmatmul.mubr.msk.bf16.vlgmr.msra.gmra.mrb[0].mxu0 %vm110_vm1, %v56_v2  ;;  %v594_v17 = vld [vmem:[#allocation7 + $0x70] sm:$0xff]   ;;  %v595_v18 = vld [vmem:[#allocation7 + $0x78] sm:$0xff]   ;;  %v596_v31 = vld [vmem:[#allocation7 + $0x80] sm:$0xff]  }
  0x3d   :  { %525 = vmatpush3.bf16.msra.mxu0 %v581_v3  ;;  %540 = vmatprep.mubr.msk.bf16.mxu0 %vm699_vm0, %v698_v0  ;;  %v464_v19 = vld [vmem:[%s821_s3] ss:$0 sm:$0xff]  ;;  %v597_v32 = vld [vmem:[#allocation7 + $0x88] sm:$0xff]   ;;  %v477_v33 = vld [vmem:[%s821_s3 + $0x1] ss:$0 sm:$0xff] }
  0x3e   :  { %526 = vmatprep.subr.bf16.mxu0 %v698_v0  ;;  %521 = vmatmul.mubr.msk.bf16.vlgmr.msra.gmra.mrb[0].mxu1 %vm110_vm1, %v57_v12  ;;  %v99_v42 = vld [vmem:[%s821_s3 + $0x3] sm:$0x1]  ;;  %v478_v44 = vld [vmem:[%s821_s3 + $0x2] ss:$0 sm:$0xff]  ;;  %s665_s3 = scalar_lea.vmem %s455_s7, 16 }
  0x3f   :  { %560 = vmatprep.mubr.msk.bf16.mxu1 %vm699_vm0, %v698_v0  ;;  %545 = vmatpush3.bf16.msra.mxu1 %v590_v13  ;;  %v598_v52 = vld [vmem:[#allocation7 + $0x90] sm:$0xff]   ;;  %p666_p10 = scmp.ne.s32.totalorder %s455_s7, %s665_s3  ;;  %p671_p12 = scmp.lt.s32.totalorder %s669_s8, %s665_s3 }
  0x40   :  { %546 = vmatprep.subr.bf16.mxu1 %v698_v0  ;;  %442 = vperm.xlu0 %579, %v99_v42  }
  0x41   :  { %527 = vmatpush3.bf16.msra.mxu0 %v582_v4  ;;  %p672_p13 = por %p671_p12, %p670_p11 }
  0x42   :  { %528 = vmatprep.subr.bf16.mxu0 %v698_v0 }
  0x43   :  { %547 = vmatpush3.bf16.msra.mxu1 %v591_v14  ;;  %p673_p0 = pnand %p672_p13, %p666_p10 }
  0x44   :  { %548 = vmatprep.subr.bf16.mxu1 %v698_v0 }
  0x45   :  { %529 = vmatpush3.bf16.msra.mxu0 %v583_v5 }
  0x46   :  { %530 = vmatprep.subr.bf16.mxu0 %v698_v0 }
  0x47   :  { %549 = vmatpush3.bf16.msra.mxu1 %v592_v15 }
  0x48   :  { %550 = vmatprep.subr.bf16.mxu1 %v698_v0 }
  0x49   :  { %531 = vmatpush3.bf16.msra.mxu0 %v584_v6 }
  0x4a   :  { %532 = vmatprep.subr.bf16.mxu0 %v698_v0 }
  0x4b   :  { %551 = vmatpush3.bf16.msra.mxu1 %v593_v16 }
  0x4c   :  { %552 = vmatprep.subr.bf16.mxu1 %v698_v0 }
  0x4d   :  { %533 = vmatpush3.bf16.msra.mxu0 %v585_v7 }
  0x4e   :  { %534 = vmatprep.subr.bf16.mxu0 %v698_v0 }
  0x4f   :  { %553 = vmatpush3.bf16.msra.mxu1 %v594_v17 }
  0x50   :  { %554 = vmatprep.subr.bf16.mxu1 %v698_v0 }
  0x51   :  { %535 = vmatpush3.bf16.msra.mxu0 %v586_v8 }
  0x52   :  { %536 = vmatprep.subr.bf16.mxu0 %v698_v0 }
  0x53   :  { %555 = vmatpush3.bf16.msra.mxu1 %v595_v18 }
  0x54   :  { %556 = vmatprep.subr.bf16.mxu1 %v698_v0 }
  0x55   :  { %537 = vmatpush3.bf16.msra.mxu0 %v587_v9 }
  0x56   :  { %538 = vmatprep.subr.bf16.mxu0 %v698_v0 }
  0x57   :  { %557 = vmatpush3.bf16.msra.mxu1 %v596_v31 }
  0x58   :  { %558 = vmatprep.subr.bf16.mxu1 %v698_v0 }
  0x59   :  { %539 = vmatpush3.bf16.msra.mxu0 %v589_v11 }
  0x5a   :  { %564 = vmatprep.subr.bf16.mxu0 %v698_v0 }
  0x5b   :  { %559 = vmatpush3.bf16.msra.mxu1 %v597_v32 }
  0xbf   :  { %v443_v53 = vpop.permute.xlu0 %442 }
 0x10f   :  { %v148_v20 = vpop.f32.mrb[0].mxu0 }
 0x110   :  { %v149_v21 = vadd.f32 %v464_v19, %v148_v20  ;;  %v516_v22 = vpop.f32.mrb[1].mxu0 }
 0x111   :  { %v151_v23 = vpop.f32.mrb[2].mxu0  ;;  %v199_v27 = vpop.f32.mrb[0].mxu1 }
 0x112   :  { %v154_v24 = vmax.f32 %v149_v21, 0.0  ;;  %v517_v25 = vpop.f32.mrb[3].mxu0  ;;  %v522_v28 = vpop.f32.mrb[1].mxu1 }
 0x113   :  { %v202_v29 = vpop.f32.mrb[2].mxu1 }
 0x114   :  { %v155_v26 = vpack.c.bf16 %v154_v24, %v154_v24  ;;  %v523_v30 = vpop.f32.mrb[3].mxu1 }
 0x116   :  { %541 = vmatmul.mubr.bf16.vlgmr.msra.gmra.mrb[4].mxu0 %v155_v26 }
 0x117   :  { %566 = vmatprep.mubr.msk.bf16.mxu0 %vm699_vm0, %v698_v0 }
 0x1e9   :  { %v287_v34 = vpop.f32.mrb[4].mxu0 }
 0x1ea   :  { %v288_v35 = vadd.f32 %v287_v34, %v199_v27  ;;  %v542_v36 = vpop.f32.mrb[5].mxu0 }
 0x1eb   :  { %v290_v37 = vpop.f32.mrb[6].mxu0 }
 0x1ec   :  { %v297_v38 = vadd.f32 %v477_v33, %v288_v35  ;;  %v543_v39 = vpop.f32.mrb[7].mxu0 }
 0x1ee   :  { %v298_v40 = vmax.f32 %v297_v38, 0.0 }
 0x1f0   :  { %v299_v41 = vpack.c.bf16 %v298_v40, %v298_v40 }
 0x1f2   :  { %561 = vmatmul.mubr.bf16.vlgmr.msra.gmra.mrb[4].mxu1 %v299_v41 }
 0x2c5   :  { %v386_v45 = vpop.f32.mrb[4].mxu1 }
 0x2c6   :  { %v387_v46 = vadd.f32 %v478_v44, %v386_v45  ;;  %v562_v47 = vpop.f32.mrb[5].mxu1 }
 0x2c7   :  { %v389_v48 = vpop.f32.mrb[6].mxu1 }
 0x2c8   :  { %v392_v49 = vmax.f32 %v387_v46, 0.0  ;;  %v563_v50 = vpop.f32.mrb[7].mxu1 }
 0x2ca   :  { %v393_v51 = vpack.c.bf16 %v392_v49, %v392_v49 }
 0x2cc   :  { %565 = vmatpush3.bf16.xpose.msra.mxu0 %v393_v51 }
 0x2d3   :  { %567 = vmatmul.mubr.bf16.vlgmr.msra.gmra.mrb[8].mxu0 %v598_v52 }
 0x3a6   :  { %v434_v54 = vpop.f32.mrb[8].mxu0 }
 0x3a7   :  { %v445_v55 = vadd.f32 %v443_v53, %v434_v54  ;;  %v568_v56 = vpop.f32.mrb[9].mxu0 }
 0x3a8   :  { %v437_v57 = vpop.f32.mrb[10].mxu0 }
 0x3a9   :  { %v569_v58 = vpop.f32.mrb[11].mxu0  ;;  %447 = vst.msk [vmem:[#allocation8] sm:$0x1] %vm446_vm2, %v445_v55 }
 0x3aa   :  { %676 = shalt.err (!%p673_p0)
}
 0x3ab   :  { %s677_s1 = scalar_lea.hbm %s822_s4, 16 }
 0x3ac   :  { %p678_p1 = scmp.ne.s32.totalorder %s822_s4, %s677_s1  ;;  %p681_p2 = scmp.lt.u32.totalorder %s677_s1, %s822_s4 }
 0x3ae   :  { %p683_p3 = pnand %p681_p2, %p678_p1 }
 0x3b0   :  { %686 = shalt.err (!%p683_p3)
}
 0x3b1   :  { %457 = dma.vmem_to_hbm [thread:$0]  %s455_s7, 16, %s822_s4, [#allocation4]  }
 0x3b2   :  { %691 = dma.done.wait [#allocation4], 16  }
 0x3b3   :  { %692 = vsyncadd [#allocation4], 4294967280 }
 0x3b4   :  { %461 = vsyncpa [#allocation3], 1 }
 0x3b5   :  { %462 = vsyncpa [#allocation6], 1 }
 0x3b6   :  { %463 = vsyncpa [#allocation4], 1 }

</bundles_post_ra>
